<compile_context>
chip_gen: v5e
topology: v5e:2x2
jax: 0.10.0
libtpu: 0.0.40
codegen_flags: <defaults>
</compile_context>

<pallas_src>
import numpy as np
import jax
import jax.numpy as jnp
from jax.experimental import pallas as pl
from jax.experimental.pallas import tpu as pltpu

_LANE = 128
_SUBLANE = 8


def _round_up(n, m):
    return (n + m - 1) // m * m


def _vmem_cap_bytes():
    """Generation-aware VMEM cap (~0.75x physical), with a safe fallback."""
    try:
        cap = int(pltpu.get_tpu_info().vmem_capacity_bytes)
    except Exception:
        cap = 64 * 1024 * 1024  # conservative (v7x physical VMEM)
    return int(0.75 * cap)


def _choose_block_b(B, requested=None, *, min_steps=4, max_block=512):
    """Pick a batch tile: multiple of 8, >= min_steps grid steps when B allows,
    preferring a divisor of B so no batch padding / trailing slice is needed."""
    if requested is not None:
        return max(_SUBLANE, _round_up(min(requested, _round_up(B, _SUBLANE)),
                                       _SUBLANE))
    bb = min(max_block,
             max(_SUBLANE, _round_up(pl.cdiv(B, min_steps), _SUBLANE)))
    cand = bb
    while cand >= _SUBLANE:
        if B % cand == 0:
            return cand
        cand -= _SUBLANE
    return bb


def _feedforward_kernel(x_ref, w1_ref, b1_ref, w2_ref, b2_ref, w3_ref, b3_ref,
                        out_ref):
    # fc1: cast the f32 input tile to bf16 for the MXU here (no wrapper pass);
    # f32 accumulation, bias + sigmoid in f32 (portable to v5e).
    x = x_ref[...].astype(w1_ref.dtype)
    h = jnp.dot(x, w1_ref[...],
                preferred_element_type=jnp.float32) + b1_ref[...]
    h = jax.nn.sigmoid(h)
    # fc2 (activations back to bf16 for the MXU, accumulate in f32).
    h = jnp.dot(h.astype(w2_ref.dtype), w2_ref[...],
                preferred_element_type=jnp.float32) + b2_ref[...]
    h = jax.nn.sigmoid(h)
    # fc3 (no activation).
    out = jnp.dot(h.astype(w3_ref.dtype), w3_ref[...],
                  preferred_element_type=jnp.float32) + b3_ref[...]
    out_ref[...] = out.astype(out_ref.dtype)


def prepare_feedforward_params(w1, b1, w2, b2, w3, b3):
    """Cast + lane-pad the static weights/biases ONCE (hoisted out of the
    per-call path).  Weights are stored [in, out] (torch weight transposed).
    fc1's K dim stays unpadded so it matches the raw (unpadded) x."""
    in_sz, hid = w1.shape
    out_sz = w3.shape[1]
    assert w2.shape == (hid, hid) and w3.shape[0] == hid

    hid_p = _round_up(hid, _LANE)
    out_p = _round_up(out_sz, _LANE)

    f32, bf16 = jnp.float32, jnp.bfloat16

    def pad2(a, rows, cols, dtype):
        a = a.astype(dtype)
        return jnp.pad(a, ((0, rows - a.shape[0]), (0, cols - a.shape[1])))

    w1_p = pad2(w1, in_sz, hid_p, bf16)            # K unpadded, N lane-dense
    w2_p = pad2(w2, hid_p, hid_p, bf16)
    w3_p = pad2(w3, hid_p, out_p, bf16)
    b1_p = pad2(b1.reshape(1, -1), 1, hid_p, f32)
    b2_p = pad2(b2.reshape(1, -1), 1, hid_p, f32)
    b3_p = pad2(b3.reshape(1, -1), 1, out_p, f32)
    return (w1_p, b1_p, w2_p, b2_p, w3_p, b3_p)


def feedforward_padded(x, params, out_sz, *, block_b=None):
    """Forward pass with pre-padded params from prepare_feedforward_params.

    x: [B, input_size] float32 (unpadded).  Returns [B, output_size] float32.
    """
    w1_p, b1_p, w2_p, b2_p, w3_p, b3_p = params
    B, in_sz = x.shape
    assert w1_p.shape[0] == in_sz
    hid_p = w1_p.shape[1]
    out_p = w3_p.shape[1]

    block_b = _choose_block_b(B, block_b)
    B_p = _round_up(B, block_b)
    n_steps = B_p // block_b

    # Pad batch only if block_b does not divide B (the default heuristic
    # avoids this whenever possible).
    x_in = x if B_p == B else jnp.pad(x, ((0, B_p - B), (0, 0)))

    # VMEM budget: bf16 resident weights (counted x2 as margin even though
    # they are single-buffered), double-buffered f32 x/out tiles, f32
    # intermediates, + headroom; capped by the generation's physical VMEM.
    w_bytes = 2 * (in_sz * hid_p + hid_p * hid_p + hid_p * out_p)
    b_bytes = 4 * (2 * hid_p + out_p)
    io_bytes = 2 * block_b * in_sz * 4 + 2 * block_b * out_p * 4
    inter_bytes = 4 * block_b * hid_p * 4
    budget = 2 * (w_bytes + b_bytes) + io_bytes + inter_bytes + (4 << 20)
    cap = _vmem_cap_bytes()
    # TODO(synk): add a hidden-dim-tiled (reduction-axis accumulator) path for
    # weights that exceed ~1/3 of VMEM; the resident-weight scheme tops out at
    # roughly half the hidden size on v7x (64 MiB) vs v5e/v6e (128 MiB).
    vmem_limit = int(min(budget, cap))

    # Constant-index weights/biases: single pipeline buffer (index never
    # changes, so a second buffer is pure VMEM waste).
    resident = lambda shape: pl.BlockSpec(shape, lambda i: (0, 0),
                                          pipeline_mode=pl.Buffered(1))

    out_padded = pl.pallas_call(
        _feedforward_kernel,
        out_shape=jax.ShapeDtypeStruct((B_p, out_p), jnp.float32),
        grid_spec=pltpu.PrefetchScalarGridSpec(
            num_scalar_prefetch=0,
            grid=(n_steps,),
            in_specs=[
                pl.BlockSpec((block_b, in_sz), lambda i: (i, 0)),  # x tile (f32)
                resident((in_sz, hid_p)),                          # w1
                resident((1, hid_p)),                              # b1
                resident((hid_p, hid_p)),                          # w2
                resident((1, hid_p)),                              # b2
                resident((hid_p, out_p)),                          # w3
                resident((1, out_p)),                              # b3
            ],
            out_specs=pl.BlockSpec((block_b, out_p), lambda i: (i, 0)),
        ),
        compiler_params=pltpu.CompilerParams(
            dimension_semantics=("parallel",),
            vmem_limit_bytes=vmem_limit),
    )(x_in, w1_p, b1_p, w2_p, b2_p, w3_p, b3_p)

    # Only slice the dims that were actually padded.
    if B_p != B:
        out_padded = out_padded[:B]
    if out_p != out_sz:
        out_padded = out_padded[:, :out_sz]
    return out_padded


def feedforward(x, w1, b1, w2, b2, w3, b3, *, block_b=None):
    """Convenience wrapper: pads params then runs the kernel (prefer calling
    prepare_feedforward_params once and reusing it across calls)."""
    params = prepare_feedforward_params(w1, b1, w2, b2, w3, b3)
    return feedforward_padded(x, params, out_sz=w3.shape[1], block_b=block_b)


def _init_linear(key, in_features, out_features):
    """Deterministic init mimicking torch.nn.Linear (uniform +-1/sqrt(in))."""
    kw, kb = jax.random.split(key)
    bound = 1.0 / np.sqrt(in_features)
    # stored as [in, out] (transposed relative to torch's [out, in])
    w = jax.random.uniform(kw, (in_features, out_features),
                           minval=-bound, maxval=bound, dtype=jnp.float32)
    b = jax.random.uniform(kb, (out_features,),
                           minval=-bound, maxval=bound, dtype=jnp.float32)
    return w, b


def _reference(x, w1, b1, w2, b2, w3, b3):
    h = jax.nn.sigmoid(x @ w1 + b1[None, :])
    h = jax.nn.sigmoid(h @ w2 + b2[None, :])
    return h @ w3 + b3[None, :]


if __name__ == "__main__":
    # Dims consistent with Feedforward(16, 32, 8); batch sized so the default
    # heuristic picks block_b=128 -> 4 grid steps (>=2 per TC on v7x), with
    # no batch padding and no trailing row slice.
    batch, input_size, hidden_size, output_size = 512, 16, 32, 8

    key = jax.random.PRNGKey(0)
    kx, k1, k2, k3 = jax.random.split(key, 4)

    x = jax.random.normal(kx, (batch, input_size), dtype=jnp.float32)
    w1, b1 = _init_linear(k1, input_size, hidden_size)
    w2, b2 = _init_linear(k2, hidden_size, hidden_size)
    w3, b3 = _init_linear(k3, hidden_size, output_size)

    # Hoisted param prep (weights are static across calls).
    params = prepare_feedforward_params(w1, b1, w2, b2, w3, b3)

    out = feedforward_padded(x, params, out_sz=output_size)
    out = jax.block_until_ready(out)

    ref = _reference(x, w1, b1, w2, b2, w3, b3)
    # bf16 matmul inputs with f32 accumulation -> ~1e-2 relative error.
    np.testing.assert_allclose(np.asarray(out), np.asarray(ref),
                               rtol=2e-2, atol=2e-2)
    print("KERNEL_OK")
</pallas_src>

<mosaic_0001>
module attributes {stable_mosaic.version = 11 : i64} {
  func.func @_feedforward_kernel(%arg0: i32, %arg1: memref<128x16xf32, #tpu.memory_space<vmem>>, %arg2: memref<16x128xbf16, #tpu.memory_space<vmem>>, %arg3: memref<1x128xf32, #tpu.memory_space<vmem>>, %arg4: memref<128x128xbf16, #tpu.memory_space<vmem>>, %arg5: memref<1x128xf32, #tpu.memory_space<vmem>>, %arg6: memref<128x128xbf16, #tpu.memory_space<vmem>>, %arg7: memref<1x128xf32, #tpu.memory_space<vmem>>, %arg8: memref<128x128xf32, #tpu.memory_space<vmem>>) attributes {dimension_semantics = [#tpu.dimension_semantics<parallel>], iteration_bounds = array<i64: 4>, scalar_prefetch = 0 : i64, scratch_operands = 0 : i64, tpu.core_type = #tpu.core_type<tc>, window_params = [{transform_indices = @transform_0, window_bounds = array<i64: 128, 16>}, {pipeline_mode = #tpu.pipeline_mode<synchronous>, transform_indices = @transform_1, window_bounds = array<i64: 16, 128>}, {pipeline_mode = #tpu.pipeline_mode<synchronous>, transform_indices = @transform_2, window_bounds = array<i64: 1, 128>}, {pipeline_mode = #tpu.pipeline_mode<synchronous>, transform_indices = @transform_3, window_bounds = array<i64: 128, 128>}, {pipeline_mode = #tpu.pipeline_mode<synchronous>, transform_indices = @transform_4, window_bounds = array<i64: 1, 128>}, {pipeline_mode = #tpu.pipeline_mode<synchronous>, transform_indices = @transform_5, window_bounds = array<i64: 128, 128>}, {pipeline_mode = #tpu.pipeline_mode<synchronous>, transform_indices = @transform_6, window_bounds = array<i64: 1, 128>}, {transform_indices = @transform_7, window_bounds = array<i64: 128, 128>}]} {
    %c0 = arith.constant 0 : index
    %c0_0 = arith.constant 0 : index
    %0 = vector.load %arg1[%c0, %c0_0] : memref<128x16xf32, #tpu.memory_space<vmem>>, vector<128x16xf32>
    %1 = arith.truncf %0 : vector<128x16xf32> to vector<128x16xbf16>
    %c0_1 = arith.constant 0 : index
    %c0_2 = arith.constant 0 : index
    %2 = vector.load %arg2[%c0_1, %c0_2] : memref<16x128xbf16, #tpu.memory_space<vmem>>, vector<16x128xbf16>
    %cst = arith.constant dense<0.000000e+00> : vector<128x128xf32>
    %3 = tpu.matmul %1, %2, %cst {dimension_numbers = #tpu.dot_dimension_numbers<[1], [0], [0], [1], [0, 0, 1, 1], [], []>} : vector<128x16xbf16>, vector<16x128xbf16>, vector<128x128xf32> -> vector<128x128xf32>
    %c0_3 = arith.constant 0 : index
    %c0_4 = arith.constant 0 : index
    %4 = vector.load %arg3[%c0_3, %c0_4] : memref<1x128xf32, #tpu.memory_space<vmem>>, vector<1x128xf32>
    %5 = vector.broadcast %4 : vector<1x128xf32> to vector<128x128xf32>
    %6 = arith.addf %3, %5 : vector<128x128xf32>
    %7 = arith.negf %6 : vector<128x128xf32>
    %8 = math.exp %7 : vector<128x128xf32>
    %cst_5 = arith.constant 1.000000e+00 : f32
    %9 = vector.broadcast %cst_5 : f32 to vector<128x128xf32>
    %10 = arith.addf %9, %8 : vector<128x128xf32>
    %11 = arith.divf %9, %10 : vector<128x128xf32>
    %12 = arith.truncf %11 : vector<128x128xf32> to vector<128x128xbf16>
    %c0_6 = arith.constant 0 : index
    %c0_7 = arith.constant 0 : index
    %13 = vector.load %arg4[%c0_6, %c0_7] : memref<128x128xbf16, #tpu.memory_space<vmem>>, vector<128x128xbf16>
    %cst_8 = arith.constant dense<0.000000e+00> : vector<128x128xf32>
    %14 = tpu.matmul %12, %13, %cst_8 {dimension_numbers = #tpu.dot_dimension_numbers<[1], [0], [0], [1], [0, 0, 1, 1], [], []>} : vector<128x128xbf16>, vector<128x128xbf16>, vector<128x128xf32> -> vector<128x128xf32>
    %c0_9 = arith.constant 0 : index
    %c0_10 = arith.constant 0 : index
    %15 = vector.load %arg5[%c0_9, %c0_10] : memref<1x128xf32, #tpu.memory_space<vmem>>, vector<1x128xf32>
    %16 = vector.broadcast %15 : vector<1x128xf32> to vector<128x128xf32>
    %17 = arith.addf %14, %16 : vector<128x128xf32>
    %18 = arith.negf %17 : vector<128x128xf32>
    %19 = math.exp %18 : vector<128x128xf32>
    %cst_11 = arith.constant 1.000000e+00 : f32
    %20 = vector.broadcast %cst_11 : f32 to vector<128x128xf32>
    %21 = arith.addf %20, %19 : vector<128x128xf32>
    %22 = arith.divf %20, %21 : vector<128x128xf32>
    %23 = arith.truncf %22 : vector<128x128xf32> to vector<128x128xbf16>
    %c0_12 = arith.constant 0 : index
    %c0_13 = arith.constant 0 : index
    %24 = vector.load %arg6[%c0_12, %c0_13] : memref<128x128xbf16, #tpu.memory_space<vmem>>, vector<128x128xbf16>
    %cst_14 = arith.constant dense<0.000000e+00> : vector<128x128xf32>
    %25 = tpu.matmul %23, %24, %cst_14 {dimension_numbers = #tpu.dot_dimension_numbers<[1], [0], [0], [1], [0, 0, 1, 1], [], []>} : vector<128x128xbf16>, vector<128x128xbf16>, vector<128x128xf32> -> vector<128x128xf32>
    %c0_15 = arith.constant 0 : index
    %c0_16 = arith.constant 0 : index
    %26 = vector.load %arg7[%c0_15, %c0_16] : memref<1x128xf32, #tpu.memory_space<vmem>>, vector<1x128xf32>
    %27 = vector.broadcast %26 : vector<1x128xf32> to vector<128x128xf32>
    %28 = arith.addf %25, %27 : vector<128x128xf32>
    %c0_17 = arith.constant 0 : index
    %c0_18 = arith.constant 0 : index
    %29 = vector.load %arg8[%c0_17, %c0_18] : memref<128x128xf32, #tpu.memory_space<vmem>>, vector<128x128xf32>
    tpu.vector_store %arg8[%c0_17, %c0_18], %28 {strides = array<i32>} : memref<128x128xf32, #tpu.memory_space<vmem>>, vector<128x128xf32>,
    return
  }
  func.func @transform_0(%arg0: i32) -> (i32, i32) {
    %c0_i32 = arith.constant 0 : i32
    %c0_i32_0 = arith.constant 0 : i32
    return %arg0, %c0_i32 : i32, i32
  }
  func.func @transform_1(%arg0: i32) -> (i32, i32) {
    %c0_i32 = arith.constant 0 : i32
    %c0_i32_0 = arith.constant 0 : i32
    %c0_i32_1 = arith.constant 0 : i32
    return %c0_i32, %c0_i32_0 : i32, i32
  }
  func.func @transform_2(%arg0: i32) -> (i32, i32) {
    %c0_i32 = arith.constant 0 : i32
    %c0_i32_0 = arith.constant 0 : i32
    %c0_i32_1 = arith.constant 0 : i32
    return %c0_i32, %c0_i32_0 : i32, i32
  }
  func.func @transform_3(%arg0: i32) -> (i32, i32) {
    %c0_i32 = arith.constant 0 : i32
    %c0_i32_0 = arith.constant 0 : i32
    %c0_i32_1 = arith.constant 0 : i32
    return %c0_i32, %c0_i32_0 : i32, i32
  }
  func.func @transform_4(%arg0: i32) -> (i32, i32) {
    %c0_i32 = arith.constant 0 : i32
    %c0_i32_0 = arith.constant 0 : i32
    %c0_i32_1 = arith.constant 0 : i32
    return %c0_i32, %c0_i32_0 : i32, i32
  }
  func.func @transform_5(%arg0: i32) -> (i32, i32) {
    %c0_i32 = arith.constant 0 : i32
    %c0_i32_0 = arith.constant 0 : i32
    %c0_i32_1 = arith.constant 0 : i32
    return %c0_i32, %c0_i32_0 : i32, i32
  }
  func.func @transform_6(%arg0: i32) -> (i32, i32) {
    %c0_i32 = arith.constant 0 : i32
    %c0_i32_0 = arith.constant 0 : i32
    %c0_i32_1 = arith.constant 0 : i32
    return %c0_i32, %c0_i32_0 : i32, i32
  }
  func.func @transform_7(%arg0: i32) -> (i32, i32) {
    %c0_i32 = arith.constant 0 : i32
    %c0_i32_0 = arith.constant 0 : i32
    return %arg0, %c0_i32 : i32, i32
  }
}

</mosaic_0001>

<bundles_post_ra>
// kernel: tpu_custom_call.1
= control target key start
LH: loop header
LB: loop body
LE: loop exit
PB: predicated region body
PF: predicated region fallthrough
CT: control target
= control target key end

     0   :  { %12 = vsyncpa [#allocation3], 0  ;;  %s2159_s0 = inlined_call_operand.vmem [shape: f32[512,16], index: 0, kind: input, shape index: {}]   ;;  %s2160_s1 = inlined_call_operand.vmem [shape: bf16[16,128], index: 1, kind: input, shape index: {}]   ;;  %s2161_s2 = inlined_call_operand.vmem [shape: f32[1,128], index: 2, kind: input, shape index: {}]   ;;  %s2162_s3 = inlined_call_operand.vmem [shape: bf16[128,128], index: 3, kind: input, shape index: {}]   ;;  %s2163_s4 = inlined_call_operand.vmem [shape: f32[1,128], index: 4, kind: input, shape index: {}]   ;;  %s2164_s5 = inlined_call_operand.vmem [shape: bf16[128,128], index: 5, kind: input, shape index: {}]   ;;  %s2165_s6 = inlined_call_operand.vmem [shape: f32[1,128], index: 6, kind: input, shape index: {}]   ;;  %s2166_s7 = inlined_call_operand.hbm [shape: f32[512,128], index: 7, kind: output, shape index: {}]  }
   0x1   :  { %14 = vsyncpa [#allocation3 + $0x1], 0  ;;  %s1775_s24 = smov 0   ;;  %s1777_s25 = smov 0  }
   0x2   :  { %s1779_s26 = smov 0   ;;  %s1781_s27 = smov 0  }
   0x3 LB: > { %s1796_s28 = sadd.s32 4294967295, %s1731_s27   ;;  %s1343_s29 = sadd.s32 4294967294, %s1731_s27   ;;  %s1731_s27 = sphi %s1781_s27, %s2198_s27   ;;  %s1727_s26 = sphi %s1779_s26, %s2197_s26   ;;  %s1723_s25 = sphi %s1777_s25, %s2196_s25   ;;  %s1719_s24 = sphi %s1775_s24, %s2195_s24  }
   0x4   : > { %s1800_s30 = sadd.s32 1, %s1731_s27   ;;  %s179_s8 = sadd.s32 1, %s1727_s26 }
   0x5   : > { %s176_s9 = ssub.s32 %s1731_s27, %s1800_s30  ;;  %p189_p0 = scmp.ne.s32.totalorder %s1727_s26, %s1723_s25 }
   0x6   : > { %p177_p1 = scmp.eq.s32.totalorder %s176_s9, 0  ;;  %p190_p2 = scmp.eq.s32.totalorder %s1796_s28, 3 }
   0x7   : > { %p195_p3 = scmp.ne.s32.totalorder %s1723_s25, %s1719_s24  ;;  %p196_p4 = scmp.eq.s32.totalorder %s1343_s29, 3 }
   0x8   : > { %s1811_s10 = scalar_select %p177_p1, %s1727_s26, %s179_s8  }
   0x9   : > { %p1813_p5 = por %p190_p2, %p189_p0  ;;  %p1817_p6 = por %p196_p4, %p195_p3 }
   0xa   : > { %p1346_p7 = scmp.ge.s32.totalorder %s1731_s27, 1  ;;  %p241_p8 = scmp.lt.s32.totalorder %s1731_s27, 5 }
   0xc   : > { %p242_p9 = pnand %p1346_p7, %p241_p8 }
   0xd   : > { %s1348_s15 = sshll.u32 (!%p242_p9), %s1796_s28, 4  ;;  %s270_s14 = sand.u32 (!%p242_p9), 1, %s1723_s25  }
   0xe   : > { %245 = sbr.rel (%p242_p9) target bundleno = 621 (0x26d), region = 48  ;;  %p274_p10 = scmp.lt.s32.totalorder (!%p242_p9), %s1348_s15, 63 }
   0xf   : > { %s1266_s8 = scalar_lea.sflag (!%p242_p9), [#allocation3], %s270_s14 }
  0x13   : > { %v1463_v0 = vld [vmem:[%s2160_s1] sm:$0xff]  ;;  %s2200_s15 = smov (!%p274_p10, %s1348_s15), 63  ;;  %vm317_vm0 = vcmask 130048   ;;  %v1471_v22 = vld [vmem:[%s2162_s3 + $0x38] sm:$0xff]  ;;  %v1470_v25 = vld [vmem:[%s2162_s3 + $0x30] sm:$0xff] }
  0x14   : > { %349 = vmatpush.bf16.msra.mxu0 %v1463_v0  ;;  %s1349_s16 = sshll.u32 %s2200_s15, 3  ;;  %771 = vmatpush.bf16.msra.mxu1 %v1471_v22  ;;  %v1469_v27 = vld [vmem:[%s2162_s3 + $0x28] sm:$0xff]  ;;  %v1468_v28 = vld [vmem:[%s2162_s3 + $0x20] sm:$0xff]  ;;  %v1467_v29 = vld [vmem:[%s2162_s3 + $0x18] sm:$0xff]  ;;  %s1347_s15 = sshll.u32 %s270_s14, 7 }
  0x15   : > { %s1830_s19 = scalar_lea.vmem %s2159_s0, %s1349_s16  ;;  %1481 = vmatpush.bf16.msra.mxu3 %v1471_v22  ;;  %v1466_v30 = vld [vmem:[%s2162_s3 + $0x10] sm:$0xff]  ;;  %v1877_v31 = vld [vmem:[%s2161_s2] ss:$0 sm:$0xff]  ;;  %v1465_v33 = vld [vmem:[%s2162_s3 + $0x8] sm:$0xff]  ;;  %s2107_s18 = scalar_lea.vmem [#allocation2], %s1347_s15 }
  0x16   : > { %v281_v1 = vld [vmem:[%s1830_s19] sm:$0xff]  ;;  %v282_v2 = vld [vmem:[%s1830_s19 + $0x8] sm:$0xff]  ;;  %v283_v4 = vld [vmem:[%s1830_s19 + $0x10] sm:$0xff]  ;;  %s1278_s23 = sshll.u32 %s2107_s18, 4  ;;  %s1689_s16 = scalar_lea.hbm %s2166_s7, 512  ;;  %s1279_s23 = int_to_ptr.vmem [resolvable:$true] %s1278_s23 }
  0x17   : > { %v297_v3 = vpack.c.bf16 %v282_v2, %v281_v1  ;;  %v284_v5 = vld [vmem:[%s1830_s19 + $0x18] sm:$0xff]  ;;  %v285_v7 = vld [vmem:[%s1830_s19 + $0x20] sm:$0xff]  ;;  %v286_v8 = vld [vmem:[%s1830_s19 + $0x28] sm:$0xff] }
  0x18   : > { %v298_v6 = vpack.c.bf16 %v284_v5, %v283_v4  ;;  %v299_v9 = vpack.c.bf16 %v286_v8, %v285_v7  ;;  %v287_v10 = vld [vmem:[%s1830_s19 + $0x30] sm:$0xff]  ;;  %v288_v11 = vld [vmem:[%s1830_s19 + $0x38] sm:$0xff]  ;;  %v289_v13 = vld [vmem:[%s1830_s19 + $0x40] sm:$0xff]  ;;  %772 = vmatpush.bf16.msra.mxu1 %v1470_v25 }
  0x19   : > { %1354 = vmatmul.msk.bf16.vlgmr.msra.gmra.mxu0 %vm317_vm0, %v297_v3  ;;  %v300_v12 = vpack.c.bf16 %v288_v11, %v287_v10  ;;  %v290_v14 = vld [vmem:[%s1830_s19 + $0x48] sm:$0xff]  ;;  %v291_v16 = vld [vmem:[%s1830_s19 + $0x50] sm:$0xff]  ;;  %v292_v17 = vld [vmem:[%s1830_s19 + $0x58] sm:$0xff]  ;;  %1482 = vmatpush.bf16.msra.mxu3 %v1470_v25 }
  0x1a   : > { %v301_v15 = vpack.c.bf16 %v290_v14, %v289_v13  ;;  %v302_v18 = vpack.c.bf16 %v292_v17, %v291_v16  ;;  %v293_v19 = vld [vmem:[%s1830_s19 + $0x60] sm:$0xff]  ;;  %v294_v20 = vld [vmem:[%s1830_s19 + $0x68] sm:$0xff]  ;;  %v295_v23 = vld [vmem:[%s1830_s19 + $0x70] sm:$0xff] }
  0x1b   : > { %v303_v21 = vpack.c.bf16 %v294_v20, %v293_v19  ;;  %v296_v24 = vld [vmem:[%s1830_s19 + $0x78] sm:$0xff]  ;;  %v1464_v36 = vld [vmem:[%s2162_s3] sm:$0xff]  ;;  %s1480_s19 = sshll.u32 %s1796_s28, 7 }
  0x1c   : > { %v304_v26 = vpack.c.bf16 %v296_v24, %v295_v23  ;;  %773 = vmatpush.bf16.msra.mxu1 %v1469_v27  ;;  %s1277_s22 = scalar_lea.hbm %s2166_s7, %s1480_s19 }
  0x1d   : > { %1483 = vmatpush.bf16.msra.mxu3 %v1469_v27  ;;  %s1280_s29 = sshll.u32 %s1277_s22, 4  ;;  %s1281_s29 = int_to_ptr.hbm [resolvable:$true] %s1280_s29 }
  0x1e   : > { %s1683_s9 = sshra.s32 %s1281_s29, 4  ;;  %s1684_s9 = int_to_ptr.hbm [resolvable:$true] %s1683_s9 }
  0x1f   : > { %s1685_s28 = scalar_lea.hbm %s1684_s9, 128  ;;  %p1690_p0 = scmp.lt.s32.totalorder %s1684_s9, %s2166_s7 }
  0x20   : > { %774 = vmatpush.bf16.msra.mxu1 %v1468_v28  ;;  %p1686_p11 = scmp.ne.s32.totalorder %s1684_s9, %s1685_s28  ;;  %p1691_p1 = scmp.lt.s32.totalorder %s1689_s16, %s1685_s28 }
  0x21   : > { %1484 = vmatpush.bf16.msra.mxu3 %v1468_v28 }
  0x22   : > { %p1687_p12 = pnand %p1686_p11, %p1813_p5  ;;  %p1692_p2 = por %p1691_p1, %p1690_p0 }
  0x24   : > { %775 = vmatpush.bf16.msra.mxu1 %v1467_v29  ;;  %p1688_p13 = pneg %p1687_p12 }
  0x25   : > { %1485 = vmatpush.bf16.msra.mxu3 %v1467_v29 }
  0x26   : > { %p1693_p3 = pnand %p1692_p2, %p1688_p13 }
  0x28   : > { %776 = vmatpush.bf16.msra.mxu1 %v1466_v30 }
  0x29   : > { %1355 = vmatmul.msk.bf16.gmra.mxu0 %vm317_vm0, %v298_v6  ;;  %1486 = vmatpush.bf16.msra.mxu3 %v1466_v30 }
  0x2c   : > { %777 = vmatpush.bf16.msra.mxu1 %v1465_v33 }
  0x2d   : > { %1487 = vmatpush.bf16.msra.mxu3 %v1465_v33 }
  0x30   : > { %778 = vmatpush.bf16.msra.mxu1 %v1464_v36 }
  0x31   : > { %1488 = vmatpush.bf16.msra.mxu3 %v1464_v36 }
  0x39   : > { %1356 = vmatmul.msk.bf16.gmra.mxu0 %vm317_vm0, %v299_v9 }
  0x49   : > { %1357 = vmatmul.msk.bf16.gmra.mxu0 %vm317_vm0, %v300_v12 }
  0x59   : > { %1358 = vmatmul.msk.bf16.gmra.mxu0 %vm317_vm0, %v301_v15 }
  0x69   : > { %1359 = vmatmul.msk.bf16.gmra.mxu0 %vm317_vm0, %v302_v18 }
  0x79   : > { %1360 = vmatmul.msk.bf16.gmra.mxu0 %vm317_vm0, %v303_v21 }
  0x89   : > { %1361 = vmatmul.msk.bf16.gmra.mxu0 %vm317_vm0, %v304_v26 }
  0x96   : > { %v351_v32 = vpop.f32.mrf.mxu0 }
  0x97   : > { %v352_v34 = vadd.f32 %v1877_v31, %v351_v32 }
  0x99   : > { %v1362_v35 = vmul.f32 -1.442695, %v352_v34 }
  0x9b   : > { %1541 = vpow2.f32 %v1362_v35 }
  0x9e   : > { %v353_v37 = vpop.f32.mrf.mxu0 }
  0x9f   : > { %v354_v38 = vadd.f32 %v1877_v31, %v353_v37 }
  0xa1   : > { %v1542_v39 = vpop.eup %1541  ;;  %v1363_v40 = vmul.f32 -1.442695, %v354_v38 }
  0xa2   : > { %v439_v41 = vadd.f32 1.0, %v1542_v39 }
  0xa3   : > { %1543 = vpow2.f32 %v1363_v40 }
  0xa4   : > { %1545 = vrcp.f32 %v439_v41  ;;  %vm460_vm2 = vweird.f32 %v439_v41  ;;  %v464_v61 = vand.u32 2147483647, %v439_v41  ;;  %v466_v62 = vand.u32 2147483648, %v439_v41 }
  0xa6   : > { %v356_v42 = vpop.f32.mrf.mxu0  ;;  %vm465_vm6 = vcmp.eq.f32.partialorder %v464_v61, 8.507059e+37  ;;  %v467_v10 = vor.u32 1.1754944e-38, %v466_v62 }
  0xa7   : > { %v357_v43 = vadd.f32 %v1877_v31, %v356_v42 }
  0xa9   : > { %v1544_v44 = vpop.eup %1543  ;;  %v1364_v45 = vmul.f32 -1.442695, %v357_v43 }
  0xaa   : > { %v1546_v46 = vpop.eup %1545  ;;  %v440_v47 = vadd.f32 1.0, %v1544_v44 }
  0xab   : > { %1547 = vpow2.f32 %v1364_v45  ;;  %v456_v48 = vmul.f32 %v1546_v46, %v439_v41  ;;  %vm461_vm1 = vweird.f32 %v1546_v46 }
  0xac   : > { %1549 = vrcp.f32 %v440_v47  ;;  %v481_v63 = vand.u32 2147483648, %v440_v47  ;;  %v479_v2 = vand.u32 2147483647, %v440_v47  ;;  %vm1893_vm4 = vmor %vm460_vm2, %vm461_vm1  ;;  %vm475_vm5 = vweird.f32 %v440_v47 }
  0xad   : > { %v457_v49 = vsub.f32 1.0, %v456_v48 }
  0xae   : > { %v358_v50 = vpop.f32.mrf.mxu0  ;;  %v482_v11 = vor.u32 1.1754944e-38, %v481_v63  ;;  %vm480_vm8 = vcmp.eq.f32.partialorder %v479_v2, 8.507059e+37 }
  0xaf   : > { %v359_v51 = vadd.f32 %v1877_v31, %v358_v50  ;;  %v458_v54 = vmul.f32 %v1546_v46, %v457_v49 }
  0xb1   : > { %v1548_v52 = vpop.eup %1547  ;;  %v1365_v53 = vmul.f32 -1.442695, %v359_v51  ;;  %v459_v58 = vadd.f32 %v1546_v46, %v458_v54 }
  0xb2   : > { %v1550_v55 = vpop.eup %1549  ;;  %v1889_v56 = vadd.f32 1.0, %v1548_v52 }
  0xb3   : > { %1551 = vpow2.f32 %v1365_v53  ;;  %v471_v57 = vmul.f32 %v1550_v55, %v440_v47  ;;  %vm476_vm3 = vweird.f32 %v1550_v55  ;;  %v463_v6 = vsel %vm1893_vm4, %v1546_v46, %v459_v58 }
  0xb4   : > { %1553 = vrcp.f32 %v1889_v56  ;;  %vm477_vm7 = vmor %vm475_vm5, %vm476_vm3  ;;  %v468_v14 = vsel %vm465_vm6, %v467_v10, %v463_v6  ;;  %vm490_vm10 = vweird.f32 %v1889_v56  ;;  %v494_v29 = vand.u32 2147483647, %v1889_v56 }
  0xb5   : > { %v472_v59 = vsub.f32 1.0, %v471_v57  ;;  %v496_v30 = vand.u32 2147483648, %v1889_v56 }
  0xb6   : > { %v361_v60 = vpop.f32.mrf.mxu0  ;;  %vm495_vm14 = vcmp.eq.f32.partialorder %v494_v29, 8.507059e+37 }
  0xb7   : > { %v362_v0 = vadd.f32 %v1877_v31, %v361_v60  ;;  %v473_v1 = vmul.f32 %v1550_v55, %v472_v59  ;;  %v497_v43 = vor.u32 1.1754944e-38, %v496_v30 }
  0xb9   : > { %v1552_v4 = vpop.eup %1551  ;;  %v1366_v5 = vmul.f32 -1.442695, %v362_v0  ;;  %v474_v7 = vadd.f32 %v1550_v55, %v473_v1 }
  0xba   : > { %v1554_v8 = vpop.eup %1553  ;;  %v442_v9 = vadd.f32 1.0, %v1552_v4 }
  0xbb   : > { %1555 = vpow2.f32 %v1366_v5  ;;  %v478_v12 = vsel %vm477_vm7, %v1550_v55, %v474_v7  ;;  %v486_v13 = vmul.f32 %v1554_v8, %v1889_v56  ;;  %vm491_vm9 = vweird.f32 %v1554_v8 }
  0xbc   : > { %1557 = vrcp.f32 %v442_v9  ;;  %v483_v15 = vsel %vm480_vm8, %v482_v11, %v478_v12  ;;  %v511_v32 = vand.u32 2147483648, %v442_v9  ;;  %v509_v35 = vand.u32 2147483647, %v442_v9  ;;  %vm1908_vm12 = vmor %vm490_vm10, %vm491_vm9 }
  0xbd   : > { %v695_v16 = vpack.c.bf16 %v483_v15, %v468_v14  ;;  %v487_v17 = vsub.f32 1.0, %v486_v13  ;;  %vm505_vm13 = vweird.f32 %v442_v9 }
  0xbe   : > { %v363_v18 = vpop.f32.mrf.mxu0  ;;  %v512_v44 = vor.u32 1.1754944e-38, %v511_v32  ;;  %vm510_vm0 = vcmp.eq.f32.partialorder %v509_v35, 8.507059e+37 }
  0xbf   : > { %v364_v19 = vadd.f32 %v1877_v31, %v363_v18  ;;  %779 = vmatmul.bf16.vlgmr.msra.gmra.mxu1 %v695_v16  ;;  %v488_v22 = vmul.f32 %v1554_v8, %v487_v17 }
  0xc1   : > { %v1556_v20 = vpop.eup %1555  ;;  %v1367_v21 = vmul.f32 -1.442695, %v364_v19  ;;  %v489_v26 = vadd.f32 %v1554_v8, %v488_v22 }
  0xc2   : > { %v1558_v23 = vpop.eup %1557  ;;  %v1901_v24 = vadd.f32 1.0, %v1556_v20 }
  0xc3   : > { %1559 = vpow2.f32 %v1367_v21  ;;  %v501_v25 = vmul.f32 %v1558_v23, %v442_v9  ;;  %vm506_vm11 = vweird.f32 %v1558_v23  ;;  %v493_v39 = vsel %vm1908_vm12, %v1554_v8, %v489_v26 }
  0xc4   : > { %1561 = vrcp.f32 %v1901_v24  ;;  %vm507_vm15 = vmor %vm505_vm13, %vm506_vm11  ;;  %v498_v47 = vsel %vm495_vm14, %v497_v43, %v493_v39  ;;  %vm520_vm2 = vweird.f32 %v1901_v24  ;;  %v524_v62 = vand.u32 2147483647, %v1901_v24 }
  0xc5   : > { %v502_v27 = vsub.f32 1.0, %v501_v25  ;;  %v526_v63 = vand.u32 2147483648, %v1901_v24 }
  0xc6   : > { %v366_v28 = vpop.f32.mrf.mxu0  ;;  %vm525_vm6 = vcmp.eq.f32.partialorder %v524_v62, 8.507059e+37 }
  0xc7   : > { %v367_v33 = vadd.f32 %v1877_v31, %v366_v28  ;;  %v503_v34 = vmul.f32 %v1558_v23, %v502_v27  ;;  %v527_v11 = vor.u32 1.1754944e-38, %v526_v63 }
  0xc9   : > { %v1560_v37 = vpop.eup %1559  ;;  %v1368_v38 = vmul.f32 -1.442695, %v367_v33  ;;  %v504_v40 = vadd.f32 %v1558_v23, %v503_v34 }
  0xca   : > { %v1562_v41 = vpop.eup %1561  ;;  %v444_v42 = vadd.f32 1.0, %v1560_v37 }
  0xcb   : > { %1563 = vpow2.f32 %v1368_v38  ;;  %v508_v45 = vsel %vm507_vm15, %v1558_v23, %v504_v40  ;;  %v516_v46 = vmul.f32 %v1562_v41, %v1901_v24  ;;  %vm521_vm1 = vweird.f32 %v1562_v41 }
  0xcc   : > { %1565 = vrcp.f32 %v444_v42  ;;  %v513_v48 = vsel %vm510_vm0, %v512_v44, %v508_v45  ;;  %v541_v0 = vand.u32 2147483648, %v444_v42  ;;  %v539_v3 = vand.u32 2147483647, %v444_v42  ;;  %vm1923_vm4 = vmor %vm520_vm2, %vm521_vm1 }
  0xcd   : > { %v696_v49 = vpack.c.bf16 %v513_v48, %v498_v47  ;;  %v517_v50 = vsub.f32 1.0, %v516_v46  ;;  %vm535_vm5 = vweird.f32 %v444_v42 }
  0xce   : > { %v368_v51 = vpop.f32.mrf.mxu0  ;;  %v542_v12 = vor.u32 1.1754944e-38, %v541_v0  ;;  %vm540_vm8 = vcmp.eq.f32.partialorder %v539_v3, 8.507059e+37 }
  0xcf   : > { %v369_v52 = vadd.f32 %v1877_v31, %v368_v51  ;;  %784 = vmatmul.bf16.gmra.mxu1 %v696_v49  ;;  %v518_v55 = vmul.f32 %v1562_v41, %v517_v50 }
  0xd1   : > { %v1564_v53 = vpop.eup %1563  ;;  %v1369_v54 = vmul.f32 -1.442695, %v369_v52  ;;  %v519_v59 = vadd.f32 %v1562_v41, %v518_v55 }
  0xd2   : > { %v1566_v56 = vpop.eup %1565  ;;  %v1916_v57 = vadd.f32 1.0, %v1564_v53 }
  0xd3   : > { %1567 = vpow2.f32 %v1369_v54  ;;  %v531_v58 = vmul.f32 %v1566_v56, %v444_v42  ;;  %vm536_vm3 = vweird.f32 %v1566_v56  ;;  %v523_v7 = vsel %vm1923_vm4, %v1562_v41, %v519_v59 }
  0xd4   : > { %1569 = vrcp.f32 %v1916_v57  ;;  %vm537_vm7 = vmor %vm535_vm5, %vm536_vm3  ;;  %v528_v15 = vsel %vm525_vm6, %v527_v11, %v523_v7  ;;  %vm550_vm10 = vweird.f32 %v1916_v57  ;;  %v554_v30 = vand.u32 2147483647, %v1916_v57 }
  0xd5   : > { %v532_v60 = vsub.f32 1.0, %v531_v58  ;;  %v556_v32 = vand.u32 2147483648, %v1916_v57 }
  0xd6   : > { %v371_v61 = vpop.f32.mrf.mxu0  ;;  %vm555_vm14 = vcmp.eq.f32.partialorder %v554_v30, 8.507059e+37 }
  0xd7   : > { %v372_v1 = vadd.f32 %v1877_v31, %v371_v61  ;;  %v533_v2 = vmul.f32 %v1566_v56, %v532_v60  ;;  %v557_v44 = vor.u32 1.1754944e-38, %v556_v32 }
  0xd9   : > { %v1568_v5 = vpop.eup %1567  ;;  %v1370_v6 = vmul.f32 -1.442695, %v372_v1  ;;  %v534_v8 = vadd.f32 %v1566_v56, %v533_v2 }
  0xda   : > { %v1570_v9 = vpop.eup %1569  ;;  %v446_v10 = vadd.f32 1.0, %v1568_v5 }
  0xdb   : > { %1571 = vpow2.f32 %v1370_v6  ;;  %v538_v13 = vsel %vm537_vm7, %v1566_v56, %v534_v8  ;;  %v546_v14 = vmul.f32 %v1570_v9, %v1916_v57  ;;  %vm551_vm9 = vweird.f32 %v1570_v9 }
  0xdc   : > { %1573 = vrcp.f32 %v446_v10  ;;  %v543_v16 = vsel %vm540_vm8, %v542_v12, %v538_v13  ;;  %v571_v33 = vand.u32 2147483648, %v446_v10  ;;  %v569_v36 = vand.u32 2147483647, %v446_v10  ;;  %vm1938_vm12 = vmor %vm550_vm10, %vm551_vm9 }
  0xdd   : > { %v697_v17 = vpack.c.bf16 %v543_v16, %v528_v15  ;;  %v547_v18 = vsub.f32 1.0, %v546_v14  ;;  %vm565_vm13 = vweird.f32 %v446_v10 }
  0xde   : > { %v373_v19 = vpop.f32.mrf.mxu0  ;;  %v572_v45 = vor.u32 1.1754944e-38, %v571_v33  ;;  %vm570_vm0 = vcmp.eq.f32.partialorder %v569_v36, 8.507059e+37 }
  0xdf   : > { %v374_v20 = vadd.f32 %v1877_v31, %v373_v19  ;;  %789 = vmatmul.bf16.gmra.mxu1 %v697_v17  ;;  %v548_v23 = vmul.f32 %v1570_v9, %v547_v18 }
  0xe1   : > { %v1572_v21 = vpop.eup %1571  ;;  %v1371_v22 = vmul.f32 -1.442695, %v374_v20  ;;  %v549_v27 = vadd.f32 %v1570_v9, %v548_v23 }
  0xe2   : > { %v1574_v24 = vpop.eup %1573  ;;  %v1931_v25 = vadd.f32 1.0, %v1572_v21 }
  0xe3   : > { %1575 = vpow2.f32 %v1371_v22  ;;  %v561_v26 = vmul.f32 %v1574_v24, %v446_v10  ;;  %vm566_vm11 = vweird.f32 %v1574_v24  ;;  %v553_v40 = vsel %vm1938_vm12, %v1570_v9, %v549_v27 }
  0xe4   : > { %1577 = vrcp.f32 %v1931_v25  ;;  %vm567_vm15 = vmor %vm565_vm13, %vm566_vm11  ;;  %v558_v48 = vsel %vm555_vm14, %v557_v44, %v553_v40  ;;  %vm580_vm2 = vweird.f32 %v1931_v25  ;;  %v584_v63 = vand.u32 2147483647, %v1931_v25 }
  0xe5   : > { %v562_v28 = vsub.f32 1.0, %v561_v26  ;;  %v586_v0 = vand.u32 2147483648, %v1931_v25 }
  0xe6   : > { %v376_v29 = vpop.f32.mrf.mxu0  ;;  %vm585_vm6 = vcmp.eq.f32.partialorder %v584_v63, 8.507059e+37 }
  0xe7   : > { %v377_v34 = vadd.f32 %v1877_v31, %v376_v29  ;;  %v563_v35 = vmul.f32 %v1574_v24, %v562_v28  ;;  %v587_v12 = vor.u32 1.1754944e-38, %v586_v0 }
  0xe9   : > { %v1576_v38 = vpop.eup %1575  ;;  %v1372_v39 = vmul.f32 -1.442695, %v377_v34  ;;  %v564_v41 = vadd.f32 %v1574_v24, %v563_v35 }
  0xea   : > { %v1578_v42 = vpop.eup %1577  ;;  %v448_v43 = vadd.f32 1.0, %v1576_v38  ;;  %v1477_v38 = vld [vmem:[%s2164_s5 + $0x28] sm:$0xff] }
  0xeb   : > { %1579 = vpow2.f32 %v1372_v39  ;;  %v568_v46 = vsel %vm567_vm15, %v1574_v24, %v564_v41  ;;  %v576_v47 = vmul.f32 %v1578_v42, %v1931_v25  ;;  %vm581_vm1 = vweird.f32 %v1578_v42 }
  0xec   : > { %1581 = vrcp.f32 %v448_v43  ;;  %v573_v49 = vsel %vm570_vm0, %v572_v45, %v568_v46  ;;  %v601_v1 = vand.u32 2147483648, %v448_v43  ;;  %v599_v4 = vand.u32 2147483647, %v448_v43  ;;  %vm1953_vm4 = vmor %vm580_vm2, %vm581_vm1 }
  0xed   : > { %v698_v50 = vpack.c.bf16 %v573_v49, %v558_v48  ;;  %v577_v51 = vsub.f32 1.0, %v576_v47  ;;  %vm595_vm5 = vweird.f32 %v448_v43 }
  0xee   : > { %v378_v52 = vpop.f32.mrf.mxu0  ;;  %v602_v13 = vor.u32 1.1754944e-38, %v601_v1  ;;  %vm600_vm8 = vcmp.eq.f32.partialorder %v599_v4, 8.507059e+37 }
  0xef   : > { %v379_v53 = vadd.f32 %v1877_v31, %v378_v52  ;;  %794 = vmatmul.bf16.gmra.mxu1 %v698_v50  ;;  %v578_v56 = vmul.f32 %v1578_v42, %v577_v51 }
  0xf1   : > { %v1580_v54 = vpop.eup %1579  ;;  %v1373_v55 = vmul.f32 -1.442695, %v379_v53  ;;  %v579_v60 = vadd.f32 %v1578_v42, %v578_v56 }
  0xf2   : > { %v1582_v57 = vpop.eup %1581  ;;  %v1946_v58 = vadd.f32 1.0, %v1580_v54 }
  0xf3   : > { %1583 = vpow2.f32 %v1373_v55  ;;  %v591_v59 = vmul.f32 %v1582_v57, %v448_v43  ;;  %vm596_vm3 = vweird.f32 %v1582_v57  ;;  %v583_v8 = vsel %vm1953_vm4, %v1578_v42, %v579_v60 }
  0xf4   : > { %1585 = vrcp.f32 %v1946_v58  ;;  %vm597_vm7 = vmor %vm595_vm5, %vm596_vm3  ;;  %v588_v16 = vsel %vm585_vm6, %v587_v12, %v583_v8  ;;  %vm610_vm10 = vweird.f32 %v1946_v58  ;;  %v614_v32 = vand.u32 2147483647, %v1946_v58 }
  0xf5   : > { %v592_v61 = vsub.f32 1.0, %v591_v59  ;;  %v616_v33 = vand.u32 2147483648, %v1946_v58 }
  0xf6   : > { %v381_v62 = vpop.f32.mrf.mxu0  ;;  %vm615_vm14 = vcmp.eq.f32.partialorder %v614_v32, 8.507059e+37 }
  0xf7   : > { %v382_v2 = vadd.f32 %v1877_v31, %v381_v62  ;;  %v593_v3 = vmul.f32 %v1582_v57, %v592_v61  ;;  %v617_v45 = vor.u32 1.1754944e-38, %v616_v33 }
  0xf9   : > { %v1584_v6 = vpop.eup %1583  ;;  %v1374_v7 = vmul.f32 -1.442695, %v382_v2  ;;  %v594_v9 = vadd.f32 %v1582_v57, %v593_v3 }
  0xfa   : > { %v1586_v10 = vpop.eup %1585  ;;  %v450_v11 = vadd.f32 1.0, %v1584_v6 }
  0xfb   : > { %1587 = vpow2.f32 %v1374_v7  ;;  %v598_v14 = vsel %vm597_vm7, %v1582_v57, %v594_v9  ;;  %v606_v15 = vmul.f32 %v1586_v10, %v1946_v58  ;;  %vm611_vm9 = vweird.f32 %v1586_v10 }
  0xfc   : > { %1589 = vrcp.f32 %v450_v11  ;;  %v603_v17 = vsel %vm600_vm8, %v602_v13, %v598_v14  ;;  %v631_v34 = vand.u32 2147483648, %v450_v11  ;;  %v629_v37 = vand.u32 2147483647, %v450_v11  ;;  %vm1968_vm12 = vmor %vm610_vm10, %vm611_vm9 }
  0xfd   : > { %v699_v18 = vpack.c.bf16 %v603_v17, %v588_v16  ;;  %v607_v19 = vsub.f32 1.0, %v606_v15  ;;  %vm625_vm13 = vweird.f32 %v450_v11 }
  0xfe   : > { %v383_v20 = vpop.f32.mrf.mxu0  ;;  %v632_v46 = vor.u32 1.1754944e-38, %v631_v34  ;;  %vm630_vm0 = vcmp.eq.f32.partialorder %v629_v37, 8.507059e+37 }
  0xff   : > { %v384_v21 = vadd.f32 %v1877_v31, %v383_v20  ;;  %799 = vmatmul.bf16.gmra.mxu1 %v699_v18  ;;  %v608_v24 = vmul.f32 %v1586_v10, %v607_v19 }
 0x101   : > { %v1588_v22 = vpop.eup %1587  ;;  %v1375_v23 = vmul.f32 -1.442695, %v384_v21  ;;  %v609_v28 = vadd.f32 %v1586_v10, %v608_v24 }
 0x102   : > { %v1590_v25 = vpop.eup %1589  ;;  %v1961_v26 = vadd.f32 1.0, %v1588_v22  ;;  %v1479_v22 = vld [vmem:[%s2164_s5 + $0x38] sm:$0xff] }
 0x103   : > { %1591 = vpow2.f32 %v1375_v23  ;;  %v621_v27 = vmul.f32 %v1590_v25, %v450_v11  ;;  %vm626_vm11 = vweird.f32 %v1590_v25  ;;  %v613_v41 = vsel %vm1968_vm12, %v1586_v10, %v609_v28  ;;  %1200 = vmatpush.bf16.msra.mxu2 %v1479_v22  ;;  %1489 = vmatpush.bf16.msrb.mxu3 %v1479_v22 }
 0x104   : > { %1593 = vrcp.f32 %v1961_v26  ;;  %vm627_vm15 = vmor %vm625_vm13, %vm626_vm11  ;;  %v618_v49 = vsel %vm615_vm14, %v617_v45, %v613_v41  ;;  %vm640_vm2 = vweird.f32 %v1961_v26  ;;  %v646_v63 = vand.u32 2147483648, %v1961_v26  ;;  %v2003_v41 = vld [vmem:[%s2163_s4] ss:$0 sm:$0xff]  ;;  %v1473_v45 = vld [vmem:[%s2164_s5 + $0x8] sm:$0xff] }
 0x105   : > { %v622_v29 = vsub.f32 1.0, %v621_v27  ;;  %v644_v1 = vand.u32 2147483647, %v1961_v26 }
 0x106   : > { %v386_v30 = vpop.f32.mrf.mxu0  ;;  %v647_v9 = vor.u32 1.1754944e-38, %v646_v63 }
 0x107   : > { %v387_v35 = vadd.f32 %v1877_v31, %v386_v30  ;;  %v623_v36 = vmul.f32 %v1590_v25, %v622_v29  ;;  %vm645_vm7 = vcmp.eq.f32.partialorder %v644_v1, 8.507059e+37  ;;  %v1478_v30 = vld [vmem:[%s2164_s5 + $0x30] sm:$0xff] }
 0x108   : > { %1201 = vmatpush.bf16.msra.mxu2 %v1478_v30  ;;  %1490 = vmatpush.bf16.msrb.mxu3 %v1478_v30 }
 0x109   : > { %v1592_v39 = vpop.eup %1591  ;;  %v1376_v40 = vmul.f32 -1.442695, %v387_v35  ;;  %v624_v42 = vadd.f32 %v1590_v25, %v623_v36 }
 0x10a   : > { %v1594_v43 = vpop.eup %1593  ;;  %v452_v44 = vadd.f32 1.0, %v1592_v39  ;;  %v1476_v39 = vld [vmem:[%s2164_s5 + $0x20] sm:$0xff] }
 0x10b   : > { %1595 = vpow2.f32 %v1376_v40  ;;  %v628_v47 = vsel %vm627_vm15, %v1590_v25, %v624_v42  ;;  %v636_v48 = vmul.f32 %v1594_v43, %v1961_v26  ;;  %vm641_vm1 = vweird.f32 %v1594_v43  ;;  %v1475_v40 = vld [vmem:[%s2164_s5 + $0x18] sm:$0xff]  ;;  %v1474_v42 = vld [vmem:[%s2164_s5 + $0x10] sm:$0xff] }
 0x10c   : > { %1597 = vrcp.f32 %v452_v44  ;;  %v633_v50 = vsel %vm630_vm0, %v632_v46, %v628_v47  ;;  %v661_v0 = vand.u32 2147483648, %v452_v44  ;;  %v659_v2 = vand.u32 2147483647, %v452_v44  ;;  %vm1979_vm4 = vmor %vm640_vm2, %vm641_vm1  ;;  %1202 = vmatpush.bf16.msra.mxu2 %v1477_v38  ;;  %1491 = vmatpush.bf16.msrb.mxu3 %v1477_v38  ;;  %v1472_v47 = vld [vmem:[%s2164_s5] sm:$0xff] }
 0x10d   : > { %v700_v51 = vpack.c.bf16 %v633_v50, %v618_v49  ;;  %v637_v52 = vsub.f32 1.0, %v636_v48  ;;  %vm655_vm5 = vweird.f32 %v452_v44 }
 0x10e   : > { %v388_v53 = vpop.f32.mrf.mxu0  ;;  %v662_v10 = vor.u32 1.1754944e-38, %v661_v0  ;;  %vm660_vm8 = vcmp.eq.f32.partialorder %v659_v2, 8.507059e+37 }
 0x10f   : > { %v389_v54 = vadd.f32 %v1877_v31, %v388_v53  ;;  %804 = vmatmul.bf16.gmra.mxu1 %v700_v51  ;;  %v638_v57 = vmul.f32 %v1594_v43, %v637_v52 }
 0x110   : > { %1203 = vmatpush.bf16.msra.mxu2 %v1476_v39  ;;  %1492 = vmatpush.bf16.msrb.mxu3 %v1476_v39 }
 0x111   : > { %v1596_v55 = vpop.eup %1595  ;;  %v1377_v56 = vmul.f32 -1.442695, %v389_v54  ;;  %v639_v61 = vadd.f32 %v1594_v43, %v638_v57 }
 0x112   : > { %v1598_v58 = vpop.eup %1597  ;;  %v453_v59 = vadd.f32 1.0, %v1596_v55 }
 0x113   : > { %1599 = vpow2.f32 %v1377_v56  ;;  %v651_v60 = vmul.f32 %v1598_v58, %v452_v44  ;;  %vm656_vm3 = vweird.f32 %v1598_v58  ;;  %v643_v5 = vsel %vm1979_vm4, %v1594_v43, %v639_v61 }
 0x114   : > { %1601 = vrcp.f32 %v453_v59  ;;  %vm657_vm6 = vmor %vm655_vm5, %vm656_vm3  ;;  %v648_v13 = vsel %vm645_vm7, %v647_v9, %v643_v5  ;;  %vm670_vm10 = vweird.f32 %v453_v59  ;;  %v676_v23 = vand.u32 2147483648, %v453_v59  ;;  %1204 = vmatpush.bf16.msra.mxu2 %v1475_v40  ;;  %1493 = vmatpush.bf16.msrb.mxu3 %v1475_v40 }
 0x115   : > { %v652_v62 = vsub.f32 1.0, %v651_v60  ;;  %v674_v25 = vand.u32 2147483647, %v453_v59 }
 0x116   : > { %v677_v32 = vor.u32 1.1754944e-38, %v676_v23 }
 0x117   : > { %v653_v31 = vmul.f32 %v1598_v58, %v652_v62  ;;  %vm675_vm15 = vcmp.eq.f32.partialorder %v674_v25, 8.507059e+37 }
 0x118   : > { %1205 = vmatpush.bf16.msra.mxu2 %v1474_v42  ;;  %1494 = vmatpush.bf16.msrb.mxu3 %v1474_v42 }
 0x119   : > { %v1600_v4 = vpop.eup %1599  ;;  %v654_v6 = vadd.f32 %v1598_v58, %v653_v31 }
 0x11a   : > { %v1602_v7 = vpop.eup %1601  ;;  %v454_v8 = vadd.f32 1.0, %v1600_v4 }
 0x11b   : > { %v658_v11 = vsel %vm657_vm6, %v1598_v58, %v654_v6  ;;  %v666_v12 = vmul.f32 %v1602_v7, %v453_v59  ;;  %vm671_vm9 = vweird.f32 %v1602_v7 }
 0x11c   : > { %1603 = vrcp.f32 %v454_v8  ;;  %v663_v14 = vsel %vm660_vm8, %v662_v10, %v658_v11  ;;  %v691_v24 = vand.u32 2147483648, %v454_v8  ;;  %v689_v27 = vand.u32 2147483647, %v454_v8  ;;  %vm672_vm12 = vmor %vm670_vm10, %vm671_vm9  ;;  %1206 = vmatpush.bf16.msra.mxu2 %v1473_v45  ;;  %1495 = vmatpush.bf16.msrb.mxu3 %v1473_v45 }
 0x11d   : > { %v701_v15 = vpack.c.bf16 %v663_v14, %v648_v13  ;;  %v667_v16 = vsub.f32 1.0, %v666_v12  ;;  %vm685_vm13 = vweird.f32 %v454_v8 }
 0x11e   : > { %v692_v33 = vor.u32 1.1754944e-38, %v691_v24  ;;  %vm690_vm0 = vcmp.eq.f32.partialorder %v689_v27, 8.507059e+37 }
 0x11f   : > { %809 = vmatmul.bf16.vlgmr.msra.gmra.mxu3 %v701_v15  ;;  %v668_v17 = vmul.f32 %v1602_v7, %v667_v16 }
 0x120   : > { %1207 = vmatpush.bf16.msra.mxu2 %v1472_v47  ;;  %1496 = vmatpush.bf16.msrb.mxu3 %v1472_v47 }
 0x121   : > { %v669_v20 = vadd.f32 %v1602_v7, %v668_v17 }
 0x122   : > { %v1604_v18 = vpop.eup %1603 }
 0x123   : > { %v681_v19 = vmul.f32 %v1604_v18, %v454_v8  ;;  %vm686_vm11 = vweird.f32 %v1604_v18  ;;  %v673_v28 = vsel %vm672_vm12, %v1602_v7, %v669_v20 }
 0x124   : > { %vm687_vm14 = vmor %vm685_vm13, %vm686_vm11  ;;  %v678_v35 = vsel %vm675_vm15, %v677_v32, %v673_v28 }
 0x125   : > { %v682_v21 = vsub.f32 1.0, %v681_v19 }
 0x127   : > { %v683_v26 = vmul.f32 %v1604_v18, %v682_v21 }
 0x129   : > { %v684_v29 = vadd.f32 %v1604_v18, %v683_v26 }
 0x12b   : > { %v688_v34 = vsel %vm687_vm14, %v1604_v18, %v684_v29 }
 0x12c   : > { %v693_v36 = vsel %vm690_vm0, %v692_v33, %v688_v34 }
 0x12d   : > { %v702_v37 = vpack.c.bf16 %v693_v36, %v678_v35 }
 0x12f   : > { %814 = vmatmul.bf16.gmra.mxu3 %v702_v37 }
 0x13c   : > { %v780_v43 = vpop.f32.mrf.mxu1 }
 0x13d   : > { %v781_v44 = vadd.f32 %v2003_v41, %v780_v43 }
 0x13f   : > { %v1410_v46 = vmul.f32 -1.442695, %v781_v44 }
 0x141   : > { %1605 = vpow2.f32 %v1410_v46 }
 0x144   : > { %v782_v48 = vpop.f32.mrf.mxu1 }
 0x145   : > { %v783_v49 = vadd.f32 %v2003_v41, %v782_v48 }
 0x147   : > { %v1606_v50 = vpop.eup %1605  ;;  %v1411_v51 = vmul.f32 -1.442695, %v783_v49 }
 0x148   : > { %v868_v52 = vadd.f32 1.0, %v1606_v50 }
 0x149   : > { %1607 = vpow2.f32 %v1411_v51 }
 0x14a   : > { %1609 = vrcp.f32 %v868_v52  ;;  %vm889_vm2 = vweird.f32 %v868_v52  ;;  %v893_v7 = vand.u32 2147483647, %v868_v52  ;;  %v895_v8 = vand.u32 2147483648, %v868_v52 }
 0x14c   : > { %v785_v53 = vpop.f32.mrf.mxu1  ;;  %vm894_vm6 = vcmp.eq.f32.partialorder %v893_v7, 8.507059e+37  ;;  %v896_v20 = vor.u32 1.1754944e-38, %v895_v8 }
 0x14d   : > { %v786_v54 = vadd.f32 %v2003_v41, %v785_v53 }
 0x14f   : > { %v1608_v55 = vpop.eup %1607  ;;  %v1412_v56 = vmul.f32 -1.442695, %v786_v54 }
 0x150   : > { %v1610_v57 = vpop.eup %1609  ;;  %v869_v58 = vadd.f32 1.0, %v1608_v55 }
 0x151   : > { %1611 = vpow2.f32 %v1412_v56  ;;  %v885_v59 = vmul.f32 %v1610_v57, %v868_v52  ;;  %vm890_vm1 = vweird.f32 %v1610_v57 }
 0x152   : > { %1613 = vrcp.f32 %v869_v58  ;;  %v910_v9 = vand.u32 2147483648, %v869_v58  ;;  %v908_v12 = vand.u32 2147483647, %v869_v58  ;;  %vm2022_vm4 = vmor %vm889_vm2, %vm890_vm1  ;;  %vm904_vm5 = vweird.f32 %v869_v58 }
 0x153   : > { %v886_v60 = vsub.f32 1.0, %v885_v59 }
 0x154   : > { %v787_v61 = vpop.f32.mrf.mxu1  ;;  %v911_v21 = vor.u32 1.1754944e-38, %v910_v9  ;;  %vm909_vm8 = vcmp.eq.f32.partialorder %v908_v12, 8.507059e+37 }
 0x155   : > { %v788_v62 = vadd.f32 %v2003_v41, %v787_v61  ;;  %v887_v1 = vmul.f32 %v1610_v57, %v886_v60 }
 0x157   : > { %v1612_v63 = vpop.eup %1611  ;;  %v1413_v0 = vmul.f32 -1.442695, %v788_v62  ;;  %v888_v4 = vadd.f32 %v1610_v57, %v887_v1 }
 0x158   : > { %v1614_v31 = vpop.eup %1613  ;;  %v2018_v2 = vadd.f32 1.0, %v1612_v63 }
 0x159   : > { %1615 = vpow2.f32 %v1413_v0  ;;  %v900_v3 = vmul.f32 %v1614_v31, %v869_v58  ;;  %vm905_vm3 = vweird.f32 %v1614_v31  ;;  %v892_v16 = vsel %vm2022_vm4, %v1610_v57, %v888_v4 }
 0x15a   : > { %1617 = vrcp.f32 %v2018_v2  ;;  %vm906_vm7 = vmor %vm904_vm5, %vm905_vm3  ;;  %v897_v24 = vsel %vm894_vm6, %v896_v20, %v892_v16  ;;  %vm919_vm10 = vweird.f32 %v2018_v2  ;;  %v923_v40 = vand.u32 2147483647, %v2018_v2 }
 0x15b   : > { %v901_v5 = vsub.f32 1.0, %v900_v3  ;;  %v925_v42 = vand.u32 2147483648, %v2018_v2 }
 0x15c   : > { %v790_v6 = vpop.f32.mrf.mxu1  ;;  %vm924_vm14 = vcmp.eq.f32.partialorder %v923_v40, 8.507059e+37 }
 0x15d   : > { %v791_v10 = vadd.f32 %v2003_v41, %v790_v6  ;;  %v902_v11 = vmul.f32 %v1614_v31, %v901_v5  ;;  %v926_v54 = vor.u32 1.1754944e-38, %v925_v42 }
 0x15f   : > { %v1616_v14 = vpop.eup %1615  ;;  %v1414_v15 = vmul.f32 -1.442695, %v791_v10  ;;  %v903_v17 = vadd.f32 %v1614_v31, %v902_v11 }
 0x160   : > { %v1618_v18 = vpop.eup %1617  ;;  %v871_v19 = vadd.f32 1.0, %v1616_v14 }
 0x161   : > { %1619 = vpow2.f32 %v1414_v15  ;;  %v907_v22 = vsel %vm906_vm7, %v1614_v31, %v903_v17  ;;  %v915_v23 = vmul.f32 %v1618_v18, %v2018_v2  ;;  %vm920_vm9 = vweird.f32 %v1618_v18 }
 0x162   : > { %1621 = vrcp.f32 %v871_v19  ;;  %v912_v25 = vsel %vm909_vm8, %v911_v21, %v907_v22  ;;  %v940_v43 = vand.u32 2147483648, %v871_v19  ;;  %v938_v46 = vand.u32 2147483647, %v871_v19  ;;  %vm2037_vm12 = vmor %vm919_vm10, %vm920_vm9 }
 0x163   : > { %v1124_v26 = vpack.c.bf16 %v912_v25, %v897_v24  ;;  %v916_v27 = vsub.f32 1.0, %v915_v23  ;;  %vm934_vm13 = vweird.f32 %v871_v19 }
 0x164   : > { %v792_v28 = vpop.f32.mrf.mxu1  ;;  %v941_v55 = vor.u32 1.1754944e-38, %v940_v43  ;;  %vm939_vm0 = vcmp.eq.f32.partialorder %v938_v46, 8.507059e+37 }
 0x165   : > { %v793_v29 = vadd.f32 %v2003_v41, %v792_v28  ;;  %1208 = vmatmul.bf16.vlgmr.msra.gmra.mxu2 %v1124_v26  ;;  %v917_v33 = vmul.f32 %v1618_v18, %v916_v27 }
 0x167   : > { %v1620_v30 = vpop.eup %1619  ;;  %v1415_v32 = vmul.f32 -1.442695, %v793_v29  ;;  %v918_v37 = vadd.f32 %v1618_v18, %v917_v33 }
 0x168   : > { %v1622_v34 = vpop.eup %1621  ;;  %v2030_v35 = vadd.f32 1.0, %v1620_v30 }
 0x169   : > { %1623 = vpow2.f32 %v1415_v32  ;;  %v930_v36 = vmul.f32 %v1622_v34, %v871_v19  ;;  %vm935_vm11 = vweird.f32 %v1622_v34  ;;  %v922_v50 = vsel %vm2037_vm12, %v1618_v18, %v918_v37 }
 0x16a   : > { %1625 = vrcp.f32 %v2030_v35  ;;  %vm936_vm15 = vmor %vm934_vm13, %vm935_vm11  ;;  %v927_v58 = vsel %vm924_vm14, %v926_v54, %v922_v50  ;;  %vm949_vm2 = vweird.f32 %v2030_v35  ;;  %v953_v8 = vand.u32 2147483647, %v2030_v35 }
 0x16b   : > { %v931_v38 = vsub.f32 1.0, %v930_v36  ;;  %v955_v9 = vand.u32 2147483648, %v2030_v35 }
 0x16c   : > { %v795_v39 = vpop.f32.mrf.mxu1  ;;  %vm954_vm6 = vcmp.eq.f32.partialorder %v953_v8, 8.507059e+37 }
 0x16d   : > { %v796_v44 = vadd.f32 %v2003_v41, %v795_v39  ;;  %v932_v45 = vmul.f32 %v1622_v34, %v931_v38  ;;  %v956_v21 = vor.u32 1.1754944e-38, %v955_v9 }
 0x16f   : > { %v1624_v48 = vpop.eup %1623  ;;  %v1416_v49 = vmul.f32 -1.442695, %v796_v44  ;;  %v933_v51 = vadd.f32 %v1622_v34, %v932_v45 }
 0x170   : > { %v1626_v52 = vpop.eup %1625  ;;  %v873_v53 = vadd.f32 1.0, %v1624_v48 }
 0x171   : > { %1627 = vpow2.f32 %v1416_v49  ;;  %v937_v56 = vsel %vm936_vm15, %v1622_v34, %v933_v51  ;;  %v945_v57 = vmul.f32 %v1626_v52, %v2030_v35  ;;  %vm950_vm1 = vweird.f32 %v1626_v52 }
 0x172   : > { %1629 = vrcp.f32 %v873_v53  ;;  %v942_v59 = vsel %vm939_vm0, %v941_v55, %v937_v56  ;;  %v970_v10 = vand.u32 2147483648, %v873_v53  ;;  %v968_v13 = vand.u32 2147483647, %v873_v53  ;;  %vm2052_vm4 = vmor %vm949_vm2, %vm950_vm1 }
 0x173   : > { %v1125_v60 = vpack.c.bf16 %v942_v59, %v927_v58  ;;  %v946_v61 = vsub.f32 1.0, %v945_v57  ;;  %vm964_vm5 = vweird.f32 %v873_v53 }
 0x174   : > { %v797_v62 = vpop.f32.mrf.mxu1  ;;  %v971_v22 = vor.u32 1.1754944e-38, %v970_v10  ;;  %vm969_vm8 = vcmp.eq.f32.partialorder %v968_v13, 8.507059e+37 }
 0x175   : > { %v798_v63 = vadd.f32 %v2003_v41, %v797_v62  ;;  %1213 = vmatmul.bf16.gmra.mxu2 %v1125_v60  ;;  %v947_v31 = vmul.f32 %v1626_v52, %v946_v61 }
 0x177   : > { %v1628_v0 = vpop.eup %1627  ;;  %v1417_v1 = vmul.f32 -1.442695, %v798_v63  ;;  %v948_v5 = vadd.f32 %v1626_v52, %v947_v31 }
 0x178   : > { %v1630_v2 = vpop.eup %1629  ;;  %v2045_v3 = vadd.f32 1.0, %v1628_v0 }
 0x179   : > { %1631 = vpow2.f32 %v1417_v1  ;;  %v960_v4 = vmul.f32 %v1630_v2, %v873_v53  ;;  %vm965_vm3 = vweird.f32 %v1630_v2  ;;  %v952_v17 = vsel %vm2052_vm4, %v1626_v52, %v948_v5 }
 0x17a   : > { %1633 = vrcp.f32 %v2045_v3  ;;  %vm966_vm7 = vmor %vm964_vm5, %vm965_vm3  ;;  %v957_v25 = vsel %vm954_vm6, %v956_v21, %v952_v17  ;;  %vm979_vm10 = vweird.f32 %v2045_v3  ;;  %v983_v42 = vand.u32 2147483647, %v2045_v3 }
 0x17b   : > { %v961_v6 = vsub.f32 1.0, %v960_v4  ;;  %v985_v43 = vand.u32 2147483648, %v2045_v3 }
 0x17c   : > { %v800_v7 = vpop.f32.mrf.mxu1  ;;  %vm984_vm14 = vcmp.eq.f32.partialorder %v983_v42, 8.507059e+37 }
 0x17d   : > { %v801_v11 = vadd.f32 %v2003_v41, %v800_v7  ;;  %v962_v12 = vmul.f32 %v1630_v2, %v961_v6  ;;  %v986_v55 = vor.u32 1.1754944e-38, %v985_v43 }
 0x17f   : > { %v1632_v15 = vpop.eup %1631  ;;  %v1418_v16 = vmul.f32 -1.442695, %v801_v11  ;;  %v963_v18 = vadd.f32 %v1630_v2, %v962_v12 }
 0x180   : > { %v1634_v19 = vpop.eup %1633  ;;  %v875_v20 = vadd.f32 1.0, %v1632_v15 }
 0x181   : > { %1635 = vpow2.f32 %v1418_v16  ;;  %v967_v23 = vsel %vm966_vm7, %v1630_v2, %v963_v18  ;;  %v975_v24 = vmul.f32 %v1634_v19, %v2045_v3  ;;  %vm980_vm9 = vweird.f32 %v1634_v19 }
 0x182   : > { %1637 = vrcp.f32 %v875_v20  ;;  %v972_v26 = vsel %vm969_vm8, %v971_v22, %v967_v23  ;;  %v1000_v44 = vand.u32 2147483648, %v875_v20  ;;  %v998_v47 = vand.u32 2147483647, %v875_v20  ;;  %vm2067_vm12 = vmor %vm979_vm10, %vm980_vm9 }
 0x183   : > { %v1126_v27 = vpack.c.bf16 %v972_v26, %v957_v25  ;;  %v976_v28 = vsub.f32 1.0, %v975_v24  ;;  %vm994_vm13 = vweird.f32 %v875_v20 }
 0x184   : > { %v802_v29 = vpop.f32.mrf.mxu1  ;;  %v1001_v56 = vor.u32 1.1754944e-38, %v1000_v44  ;;  %vm999_vm0 = vcmp.eq.f32.partialorder %v998_v47, 8.507059e+37 }
 0x185   : > { %v803_v30 = vadd.f32 %v2003_v41, %v802_v29  ;;  %1218 = vmatmul.bf16.gmra.mxu2 %v1126_v27  ;;  %v977_v34 = vmul.f32 %v1634_v19, %v976_v28 }
 0x187   : > { %v1636_v32 = vpop.eup %1635  ;;  %v1419_v33 = vmul.f32 -1.442695, %v803_v30  ;;  %v978_v38 = vadd.f32 %v1634_v19, %v977_v34 }
 0x188   : > { %v1638_v35 = vpop.eup %1637  ;;  %v2060_v36 = vadd.f32 1.0, %v1636_v32 }
 0x189   : > { %1639 = vpow2.f32 %v1419_v33  ;;  %v990_v37 = vmul.f32 %v1638_v35, %v875_v20  ;;  %vm995_vm11 = vweird.f32 %v1638_v35  ;;  %v982_v51 = vsel %vm2067_vm12, %v1634_v19, %v978_v38 }
 0x18a   : > { %1641 = vrcp.f32 %v2060_v36  ;;  %vm996_vm15 = vmor %vm994_vm13, %vm995_vm11  ;;  %v987_v59 = vsel %vm984_vm14, %v986_v55, %v982_v51  ;;  %vm1009_vm2 = vweird.f32 %v2060_v36  ;;  %v1015_v8 = vand.u32 2147483648, %v2060_v36 }
 0x18b   : > { %v991_v39 = vsub.f32 1.0, %v990_v37  ;;  %v1013_v10 = vand.u32 2147483647, %v2060_v36 }
 0x18c   : > { %v805_v40 = vpop.f32.mrf.mxu1  ;;  %v1016_v19 = vor.u32 1.1754944e-38, %v1015_v8 }
 0x18d   : > { %v806_v45 = vadd.f32 %v2003_v41, %v805_v40  ;;  %v992_v46 = vmul.f32 %v1638_v35, %v991_v39  ;;  %vm1014_vm7 = vcmp.eq.f32.partialorder %v1013_v10, 8.507059e+37 }
 0x18f   : > { %v1640_v49 = vpop.eup %1639  ;;  %v1420_v50 = vmul.f32 -1.442695, %v806_v45  ;;  %v993_v52 = vadd.f32 %v1638_v35, %v992_v46 }
 0x190   : > { %v1642_v53 = vpop.eup %1641  ;;  %v877_v54 = vadd.f32 1.0, %v1640_v49 }
 0x191   : > { %1643 = vpow2.f32 %v1420_v50  ;;  %v997_v57 = vsel %vm996_vm15, %v1638_v35, %v993_v52  ;;  %v1005_v58 = vmul.f32 %v1642_v53, %v2060_v36  ;;  %vm1010_vm1 = vweird.f32 %v1642_v53 }
 0x192   : > { %1645 = vrcp.f32 %v877_v54  ;;  %v1002_v60 = vsel %vm999_vm0, %v1001_v56, %v997_v57  ;;  %v1030_v9 = vand.u32 2147483648, %v877_v54  ;;  %v1028_v12 = vand.u32 2147483647, %v877_v54  ;;  %vm2081_vm4 = vmor %vm1009_vm2, %vm1010_vm1 }
 0x193   : > { %v1127_v61 = vpack.c.bf16 %v1002_v60, %v987_v59  ;;  %v1006_v62 = vsub.f32 1.0, %v1005_v58  ;;  %vm1024_vm5 = vweird.f32 %v877_v54 }
 0x194   : > { %v807_v63 = vpop.f32.mrf.mxu1  ;;  %v1031_v20 = vor.u32 1.1754944e-38, %v1030_v9  ;;  %vm1029_vm8 = vcmp.eq.f32.partialorder %v1028_v12, 8.507059e+37 }
 0x195   : > { %v808_v0 = vadd.f32 %v2003_v41, %v807_v63  ;;  %1223 = vmatmul.bf16.gmra.mxu2 %v1127_v61  ;;  %v1007_v2 = vmul.f32 %v1642_v53, %v1006_v62 }
 0x197   : > { %v1644_v1 = vpop.eup %1643  ;;  %v1421_v31 = vmul.f32 -1.442695, %v808_v0  ;;  %v1008_v6 = vadd.f32 %v1642_v53, %v1007_v2 }
 0x198   : > { %v1646_v3 = vpop.eup %1645  ;;  %v2075_v4 = vadd.f32 1.0, %v1644_v1 }
 0x199   : > { %1647 = vpow2.f32 %v1421_v31  ;;  %v1020_v5 = vmul.f32 %v1646_v3, %v877_v54  ;;  %vm1025_vm3 = vweird.f32 %v1646_v3  ;;  %v1012_v15 = vsel %vm2081_vm4, %v1642_v53, %v1008_v6 }
 0x19a   : > { %1649 = vrcp.f32 %v2075_v4  ;;  %vm1026_vm6 = vmor %vm1024_vm5, %vm1025_vm3  ;;  %v1017_v24 = vsel %vm1014_vm7, %v1016_v19, %v1012_v15  ;;  %vm1039_vm10 = vweird.f32 %v2075_v4  ;;  %v1043_v38 = vand.u32 2147483647, %v2075_v4 }
 0x19b   : > { %v1021_v7 = vsub.f32 1.0, %v1020_v5  ;;  %v1045_v39 = vand.u32 2147483648, %v2075_v4 }
 0x19c   : > { %vm1044_vm15 = vcmp.eq.f32.partialorder %v1043_v38, 8.507059e+37 }
 0x19d   : > { %v1022_v11 = vmul.f32 %v1646_v3, %v1021_v7  ;;  %v1046_v49 = vor.u32 1.1754944e-38, %v1045_v39 }
 0x19f   : > { %v1648_v14 = vpop.eup %1647  ;;  %v1023_v16 = vadd.f32 %v1646_v3, %v1022_v11 }
 0x1a0   : > { %v1650_v17 = vpop.eup %1649  ;;  %v879_v18 = vadd.f32 1.0, %v1648_v14 }
 0x1a1   : > { %v1027_v21 = vsel %vm1026_vm6, %v1646_v3, %v1023_v16  ;;  %v1035_v22 = vmul.f32 %v1650_v17, %v2075_v4  ;;  %vm1040_vm9 = vweird.f32 %v1650_v17 }
 0x1a2   : > { %1651 = vrcp.f32 %v879_v18  ;;  %v810_v23 = vpop.f32.mrf.mxu3  ;;  %v1032_v25 = vsel %vm1029_vm8, %v1031_v20, %v1027_v21  ;;  %v1060_v40 = vand.u32 2147483648, %v879_v18  ;;  %v1058_v45 = vand.u32 2147483647, %v879_v18  ;;  %vm1041_vm12 = vmor %vm1039_vm10, %vm1040_vm9 }
 0x1a3   : > { %v811_v26 = vadd.f32 %v2003_v41, %v810_v23  ;;  %v1128_v27 = vpack.c.bf16 %v1032_v25, %v1017_v24  ;;  %v1036_v28 = vsub.f32 1.0, %v1035_v22  ;;  %vm1054_vm13 = vweird.f32 %v879_v18 }
 0x1a4   : > { %v1061_v50 = vor.u32 1.1754944e-38, %v1060_v40  ;;  %vm1059_vm0 = vcmp.eq.f32.partialorder %v1058_v45, 8.507059e+37 }
 0x1a5   : > { %v1422_v29 = vmul.f32 -1.442695, %v811_v26  ;;  %1228 = vmatmul.bf16.gmra.mxu2 %v1128_v27  ;;  %v1037_v30 = vmul.f32 %v1650_v17, %v1036_v28 }
 0x1a7   : > { %1653 = vpow2.f32 %v1422_v29  ;;  %v1038_v36 = vadd.f32 %v1650_v17, %v1037_v30 }
 0x1a8   : > { %v1652_v32 = vpop.eup %1651 }
 0x1a9   : > { %v1050_v33 = vmul.f32 %v1652_v32, %v879_v18  ;;  %vm1055_vm11 = vweird.f32 %v1652_v32  ;;  %v1042_v47 = vsel %vm1041_vm12, %v1650_v17, %v1038_v36 }
 0x1aa   : > { %v812_v34 = vpop.f32.mrf.mxu3  ;;  %vm1056_vm14 = vmor %vm1054_vm13, %vm1055_vm11  ;;  %v1047_v53 = vsel %vm1044_vm15, %v1046_v49, %v1042_v47 }
 0x1ab   : > { %v813_v35 = vadd.f32 %v2003_v41, %v812_v34  ;;  %v1051_v37 = vsub.f32 1.0, %v1050_v33 }
 0x1ad   : > { %v1654_v42 = vpop.eup %1653  ;;  %v1423_v43 = vmul.f32 -1.442695, %v813_v35  ;;  %v1052_v44 = vmul.f32 %v1652_v32, %v1051_v37 }
 0x1ae   : > { %v880_v46 = vadd.f32 1.0, %v1654_v42 }
 0x1af   : > { %1655 = vpow2.f32 %v1423_v43  ;;  %v1053_v48 = vadd.f32 %v1652_v32, %v1052_v44 }
 0x1b0   : > { %1657 = vrcp.f32 %v880_v46  ;;  %vm1069_vm2 = vweird.f32 %v880_v46  ;;  %v1075_v8 = vand.u32 2147483648, %v880_v46  ;;  %v1073_v10 = vand.u32 2147483647, %v880_v46 }
 0x1b1   : > { %v1057_v51 = vsel %vm1056_vm14, %v1652_v32, %v1053_v48 }
 0x1b2   : > { %v815_v52 = vpop.f32.mrf.mxu3  ;;  %v1062_v54 = vsel %vm1059_vm0, %v1061_v50, %v1057_v51  ;;  %v1076_v18 = vor.u32 1.1754944e-38, %v1075_v8  ;;  %vm1074_vm7 = vcmp.eq.f32.partialorder %v1073_v10, 8.507059e+37 }
 0x1b3   : > { %v816_v55 = vadd.f32 %v2003_v41, %v815_v52  ;;  %v1129_v56 = vpack.c.bf16 %v1062_v54, %v1047_v53 }
 0x1b5   : > { %v1656_v57 = vpop.eup %1655  ;;  %v1424_v58 = vmul.f32 -1.442695, %v816_v55  ;;  %1233 = vmatmul.bf16.gmra.mxu2 %v1129_v56 }
 0x1b6   : > { %v1658_v59 = vpop.eup %1657  ;;  %v881_v60 = vadd.f32 1.0, %v1656_v57 }
 0x1b7   : > { %v1065_v61 = vmul.f32 %v1658_v59, %v880_v46  ;;  %1659 = vpow2.f32 %v1424_v58  ;;  %vm1070_vm1 = vweird.f32 %v1658_v59  ;;  %v1540_v46 = vld [vmem:[%s2165_s6] ss:$0 sm:$0xff] }
 0x1b8   : > { %1661 = vrcp.f32 %v881_v60  ;;  %v1090_v9 = vand.u32 2147483648, %v881_v60  ;;  %v1088_v12 = vand.u32 2147483647, %v881_v60  ;;  %vm2095_vm4 = vmor %vm1069_vm2, %vm1070_vm1  ;;  %vm1084_vm5 = vweird.f32 %v881_v60 }
 0x1b9   : > { %v1066_v62 = vsub.f32 1.0, %v1065_v61 }
 0x1ba   : > { %v817_v63 = vpop.f32.mrf.mxu3  ;;  %v1091_v19 = vor.u32 1.1754944e-38, %v1090_v9  ;;  %vm1089_vm8 = vcmp.eq.f32.partialorder %v1088_v12, 8.507059e+37 }
 0x1bb   : > { %v818_v0 = vadd.f32 %v2003_v41, %v817_v63  ;;  %v1067_v2 = vmul.f32 %v1658_v59, %v1066_v62 }
 0x1bd   : > { %v1660_v1 = vpop.eup %1659  ;;  %v1425_v31 = vmul.f32 -1.442695, %v818_v0  ;;  %v1068_v6 = vadd.f32 %v1658_v59, %v1067_v2 }
 0x1be   : > { %v1662_v3 = vpop.eup %1661  ;;  %v882_v4 = vadd.f32 1.0, %v1660_v1 }
 0x1bf   : > { %v1080_v5 = vmul.f32 %v1662_v3, %v881_v60  ;;  %1663 = vpow2.f32 %v1425_v31  ;;  %vm1085_vm3 = vweird.f32 %v1662_v3  ;;  %v1072_v14 = vsel %vm2095_vm4, %v1658_v59, %v1068_v6 }
 0x1c0   : > { %1665 = vrcp.f32 %v882_v4  ;;  %vm1086_vm6 = vmor %vm1084_vm5, %vm1085_vm3  ;;  %v1077_v22 = vsel %vm1074_vm7, %v1076_v18, %v1072_v14  ;;  %vm1099_vm10 = vweird.f32 %v882_v4  ;;  %v1105_v32 = vand.u32 2147483648, %v882_v4 }
 0x1c1   : > { %v1081_v7 = vsub.f32 1.0, %v1080_v5  ;;  %v1103_v34 = vand.u32 2147483647, %v882_v4 }
 0x1c2   : > { %v1106_v39 = vor.u32 1.1754944e-38, %v1105_v32 }
 0x1c3   : > { %v1082_v11 = vmul.f32 %v1662_v3, %v1081_v7  ;;  %vm1104_vm15 = vcmp.eq.f32.partialorder %v1103_v34, 8.507059e+37 }
 0x1c5   : > { %v1664_v13 = vpop.eup %1663  ;;  %v1083_v15 = vadd.f32 %v1662_v3, %v1082_v11 }
 0x1c6   : > { %v1666_v16 = vpop.eup %1665  ;;  %v883_v17 = vadd.f32 1.0, %v1664_v13 }
 0x1c7   : > { %v1087_v20 = vsel %vm1086_vm6, %v1662_v3, %v1083_v15  ;;  %v1095_v21 = vmul.f32 %v1666_v16, %v882_v4  ;;  %vm1100_vm9 = vweird.f32 %v1666_v16 }
 0x1c8   : > { %1667 = vrcp.f32 %v883_v17  ;;  %v1092_v23 = vsel %vm1089_vm8, %v1091_v19, %v1087_v20  ;;  %v1120_v33 = vand.u32 2147483648, %v883_v17  ;;  %v1118_v36 = vand.u32 2147483647, %v883_v17  ;;  %vm1101_vm12 = vmor %vm1099_vm10, %vm1100_vm9 }
 0x1c9   : > { %v1130_v24 = vpack.c.bf16 %v1092_v23, %v1077_v22  ;;  %v1096_v25 = vsub.f32 1.0, %v1095_v21  ;;  %vm1114_vm13 = vweird.f32 %v883_v17 }
 0x1ca   : > { %v1121_v40 = vor.u32 1.1754944e-38, %v1120_v33  ;;  %vm1119_vm0 = vcmp.eq.f32.partialorder %v1118_v36, 8.507059e+37 }
 0x1cb   : > { %1238 = vmatmul.bf16.vlgmr.msrb.gmra.mxu3 %v1130_v24  ;;  %v1097_v26 = vmul.f32 %v1666_v16, %v1096_v25 }
 0x1cd   : > { %v1098_v29 = vadd.f32 %v1666_v16, %v1097_v26 }
 0x1ce   : > { %v1668_v27 = vpop.eup %1667 }
 0x1cf   : > { %v1110_v28 = vmul.f32 %v1668_v27, %v883_v17  ;;  %vm1115_vm11 = vweird.f32 %v1668_v27  ;;  %v1102_v37 = vsel %vm1101_vm12, %v1666_v16, %v1098_v29 }
 0x1d0   : > { %vm1116_vm14 = vmor %vm1114_vm13, %vm1115_vm11  ;;  %v1107_v43 = vsel %vm1104_vm15, %v1106_v39, %v1102_v37 }
 0x1d1   : > { %v1111_v30 = vsub.f32 1.0, %v1110_v28 }
 0x1d3   : > { %v1112_v35 = vmul.f32 %v1668_v27, %v1111_v30 }
 0x1d5   : > { %v1113_v38 = vadd.f32 %v1668_v27, %v1112_v35 }
 0x1d7   : > { %v1117_v42 = vsel %vm1116_vm14, %v1668_v27, %v1113_v38 }
 0x1d8   : > { %v1122_v44 = vsel %vm1119_vm0, %v1121_v40, %v1117_v42 }
 0x1d9   : > { %v1131_v45 = vpack.c.bf16 %v1122_v44, %v1107_v43 }
 0x1db   : > { %1243 = vmatmul.bf16.gmra.mxu3 %v1131_v45 }
 0x1e8   : > { %v1209_v47 = vpop.f32.mrf.mxu2 }
 0x1e9   : > { %v1210_v48 = vadd.f32 %v1540_v46, %v1209_v47 }
 0x1eb   : > { %1249 = vst [vmem:[%s2107_s18] sm:$0xff] %v1210_v48 }
 0x1f0   : > { %v1211_v49 = vpop.f32.mrf.mxu2 }
 0x1f1   : > { %v1212_v50 = vadd.f32 %v1540_v46, %v1211_v49 }
 0x1f3   : > { %1250 = vst [vmem:[%s2107_s18 + $0x8] sm:$0xff] %v1212_v50 }
 0x1f8   : > { %v1214_v51 = vpop.f32.mrf.mxu2 }
 0x1f9   : > { %v1215_v52 = vadd.f32 %v1540_v46, %v1214_v51 }
 0x1fb   : > { %1251 = vst [vmem:[%s2107_s18 + $0x10] sm:$0xff] %v1215_v52 }
 0x200   : > { %v1216_v53 = vpop.f32.mrf.mxu2 }
 0x201   : > { %v1217_v54 = vadd.f32 %v1540_v46, %v1216_v53 }
 0x203   : > { %1252 = vst [vmem:[%s2107_s18 + $0x18] sm:$0xff] %v1217_v54 }
 0x208   : > { %v1219_v55 = vpop.f32.mrf.mxu2 }
 0x209   : > { %v1220_v56 = vadd.f32 %v1540_v46, %v1219_v55 }
 0x20b   : > { %1253 = vst [vmem:[%s2107_s18 + $0x20] sm:$0xff] %v1220_v56 }
 0x210   : > { %v1221_v57 = vpop.f32.mrf.mxu2 }
 0x211   : > { %v1222_v58 = vadd.f32 %v1540_v46, %v1221_v57 }
 0x213   : > { %1254 = vst [vmem:[%s2107_s18 + $0x28] sm:$0xff] %v1222_v58 }
 0x218   : > { %v1224_v59 = vpop.f32.mrf.mxu2 }
 0x219   : > { %v1225_v60 = vadd.f32 %v1540_v46, %v1224_v59 }
 0x21b   : > { %1255 = vst [vmem:[%s2107_s18 + $0x30] sm:$0xff] %v1225_v60 }
 0x220   : > { %v1226_v61 = vpop.f32.mrf.mxu2 }
 0x221   : > { %v1227_v62 = vadd.f32 %v1540_v46, %v1226_v61 }
 0x223   : > { %1256 = vst [vmem:[%s2107_s18 + $0x38] sm:$0xff] %v1227_v62 }
 0x228   : > { %v1229_v63 = vpop.f32.mrf.mxu2 }
 0x229   : > { %v1230_v0 = vadd.f32 %v1540_v46, %v1229_v63 }
 0x22b   : > { %1257 = vst [vmem:[%s2107_s18 + $0x40] sm:$0xff] %v1230_v0 }
 0x230   : > { %v1231_v1 = vpop.f32.mrf.mxu2 }
 0x231   : > { %v1232_v31 = vadd.f32 %v1540_v46, %v1231_v1 }
 0x233   : > { %1258 = vst [vmem:[%s2107_s18 + $0x48] sm:$0xff] %v1232_v31 }
 0x238   : > { %v1234_v2 = vpop.f32.mrf.mxu2 }
 0x239   : > { %v1235_v3 = vadd.f32 %v1540_v46, %v1234_v2 }
 0x23b   : > { %1259 = vst [vmem:[%s2107_s18 + $0x50] sm:$0xff] %v1235_v3 }
 0x240   : > { %v1236_v4 = vpop.f32.mrf.mxu2 }
 0x241   : > { %v1237_v5 = vadd.f32 %v1540_v46, %v1236_v4 }
 0x243   : > { %1260 = vst [vmem:[%s2107_s18 + $0x58] sm:$0xff] %v1237_v5 }
 0x24e   : > { %v1239_v6 = vpop.f32.mrf.mxu3 }
 0x24f   : > { %v1240_v7 = vadd.f32 %v1540_v46, %v1239_v6 }
 0x251   : > { %1261 = vst [vmem:[%s2107_s18 + $0x60] sm:$0xff] %v1240_v7 }
 0x256   : > { %v1241_v8 = vpop.f32.mrf.mxu3 }
 0x257   : > { %v1242_v9 = vadd.f32 %v1540_v46, %v1241_v8 }
 0x259   : > { %1262 = vst [vmem:[%s2107_s18 + $0x68] sm:$0xff] %v1242_v9 }
 0x25e   : > { %v1244_v10 = vpop.f32.mrf.mxu3 }
 0x25f   : > { %v1245_v11 = vadd.f32 %v1540_v46, %v1244_v10 }
 0x261   : > { %1263 = vst [vmem:[%s2107_s18 + $0x70] sm:$0xff] %v1245_v11 }
 0x266   : > { %v1246_v12 = vpop.f32.mrf.mxu3 }
 0x267   : > { %v1247_v41 = vadd.f32 %v1540_v46, %v1246_v12 }
 0x269   : > { %1264 = vst [vmem:[%s2107_s18 + $0x78] sm:$0xff] %v1247_v41 }
 0x26a   : > { %1696 = shalt.err (!%p1693_p3)
}
 0x26b   : > { %s1733_s14 = smov 128   ;;  %s1734_s18 = smov 8  }
 0x26c   : > { %1497 = dma.vmem_to_hbm [thread:$0]  (%p1813_p5), %s1279_s23, 2048, %s1281_s29, %s1266_s8, %s1733_s14, %s1733_s14, %s1734_s18  }
 0x26d PF: > { %p1503_p4 = scmp.ge.s32.totalorder %s1731_s27, 2  ;;  %s1295_s20 = sand.u32 1, %s1719_s24  }
 0x26e   : > { %s1296_s21 = scalar_lea.sflag [#allocation3], %s1295_s20 }
 0x26f   : > { %p1500_p7 = pnand %p1503_p4, %p1817_p6 }
 0x271   : > { %p1501_p8 = pneg %p1500_p7 }
 0x273   : > { %1714 = dma.done.wait (%p1501_p8), %s1296_s21, 2048  }
 0x274   : > { %1716 = vsyncadd (%p1501_p8), %s1296_s21, 4294965248  ;;  %p17_p9 = scmp.ge.s32.totalorder %s1800_s30, 6   ;;  %s2195_s24 = smov %s1723_s25 }
 0x275   : > { %s2196_s25 = smov %s1727_s26  ;;  %s2197_s26 = smov %s1811_s10 }
 0x276   : > { %s2198_s27 = smov %s1800_s30  ;;  %19 = sbr.rel (!%p17_p9) target bundleno = 3 (0x3), region = 83 }
 0x27b   :  { %1302 = vsyncpa [#allocation3], 1 }
 0x27c   :  { %1304 = vsyncpa [#allocation3 + $0x1], 1 }

</bundles_post_ra>
